<compile_context>
chip_gen: v6e
topology: v6e:2x2x1
jax: 0.10.0
libtpu: 0.0.40
codegen_flags: <defaults>
</compile_context>

<pallas_src>
import jax
import jax.numpy as jnp
from jax import lax
from jax.experimental import pallas as pl
from jax.experimental.pallas import tpu as pltpu


def _round_up(x, m):
    return (x + m - 1) // m * m


def _hw_prep_kernel(h_ref, w_ref, norm_out_ref, hw_ref):
    """HW_aug = [ (H @ W) * D_out^{-1/2} | zeros | ones-column ], cast to bf16."""
    hw = jnp.dot(h_ref[...], w_ref[...], preferred_element_type=jnp.float32)
    hw = hw * norm_out_ref[...]
    nhid_pad = hw_ref.shape[-1]
    lane = lax.broadcasted_iota(jnp.int32, (1, nhid_pad), 1)
    # Last lane column is all ones: A @ HW_aug then yields in-degrees for free.
    hw_aug = jnp.where(lane == nhid_pad - 1, 1.0, hw)
    hw_ref[...] = hw_aug.astype(hw_ref.dtype)


def _make_agg_ln_kernel(nhid, eps):
    def kernel(a_ref, hw_ref, b_ref, gamma_ref, beta_ref, o_ref):
        a = a_ref[...]                                    # (tm, n_pad) bf16, raw 0/1
        # One MXU pass: cols [:nhid] aggregate HW*norm_out, last col = deg_in.
        xd = jnp.dot(a, hw_ref[...], preferred_element_type=jnp.float32)
        deg_in = xd[:, -1:]                               # (tm, 1)
        norm_in = jnp.where(deg_in > 0, lax.rsqrt(deg_in), 0.0)

        nhid_pad = xd.shape[-1]
        lane = lax.broadcasted_iota(jnp.int32, (1, nhid_pad), 1)
        mask = lane < nhid                                # true feature columns only

        x = jnp.where(mask, xd * norm_in + b_ref[...], 0.0)

        # LayerNorm over the true nhid columns (eps = 1e-5, PyTorch default).
        inv_n = jnp.float32(1.0 / nhid)
        mean = jnp.sum(x, axis=-1, keepdims=True) * inv_n
        diff = jnp.where(mask, x - mean, 0.0)
        var = jnp.sum(diff * diff, axis=-1, keepdims=True) * inv_n
        xn = diff * lax.rsqrt(var + eps)
        o_ref[...] = xn * gamma_ref[...] + beta_ref[...]

    return kernel


def gcn_layer_forward(adj, h, w, b, gamma, beta, *, eps=1e-5):
    n, nfeat = h.shape
    nhid = w.shape[1]

    f32 = jnp.float32
    nfeat_pad = _round_up(nfeat, 128)
    # +1 column reserved for the in-degree ("ones") column of HW_aug.
    nhid_pad = _round_up(nhid + 1, 128)

    # VMEM budget: v5e/v6e have 128 MiB physical, v7x only 64 MiB per TC.
    try:
        vmem_cap = pltpu.get_tpu_info().vmem_capacity_bytes
    except Exception:
        vmem_cap = 64 * 1024 * 1024
    vmem_limit = min(int(vmem_cap * 0.75), 112 * 1024 * 1024)

    # Row-tile size: biggest multiple of 16 such that the double-buffered bf16
    # A tile + resident HW_aug + f32 output tile fit under the VMEM budget.
    n_est = _round_up(n, 16)
    tm = min(256, n_est)

    def _fits(t):
        a_bytes = 2 * t * n_est * 2           # bf16 A row tile, double-buffered
        hw_bytes = 2 * n_est * nhid_pad * 2   # resident HW_aug (conservative x2)
        out_bytes = 2 * t * nhid_pad * 4      # f32 output tile, double-buffered
        return a_bytes + hw_bytes + out_bytes <= int(0.8 * vmem_limit)

    while tm > 16 and not _fits(tm):
        tm = max(16, (tm // 2) // 16 * 16)
    n_pad = _round_up(n, tm)
    # TODO(synk): for graphs where HW_aug itself exceeds VMEM (N in the
    # hundreds of thousands), the contraction dim would also need tiling.

    # Symmetric-norm prologue: deg_out needs FULL columns of A -> one fused
    # XLA pass over A outside the row-tiled hot kernel.
    deg_out = jnp.sum(adj.astype(f32), axis=0)
    norm_out = jnp.where(deg_out > 0, lax.rsqrt(deg_out), 0.0).reshape(n, 1)

    # Zero-pad to lane/sublane-friendly shapes (exact no-ops for the math).
    adj_p = jnp.pad(adj.astype(jnp.bfloat16), ((0, n_pad - n), (0, n_pad - n)))
    h_p = jnp.pad(h.astype(f32), ((0, n_pad - n), (0, nfeat_pad - nfeat)))
    w_p = jnp.pad(w.astype(f32), ((0, nfeat_pad - nfeat), (0, nhid_pad - nhid)))
    norm_p = jnp.pad(norm_out.astype(f32), ((0, n_pad - n), (0, 0)))
    b_p = jnp.pad(jnp.reshape(b, (1, nhid)).astype(f32), ((0, 0), (0, nhid_pad - nhid)))
    g_p = jnp.pad(jnp.reshape(gamma, (1, nhid)).astype(f32), ((0, 0), (0, nhid_pad - nhid)))
    beta_p = jnp.pad(jnp.reshape(beta, (1, nhid)).astype(f32), ((0, 0), (0, nhid_pad - nhid)))

    cparams = pltpu.CompilerParams(
        dimension_semantics=("parallel",),    # shard row tiles across TCs (v7x)
        vmem_limit_bytes=vmem_limit,
    )
    grid = (n_pad // tm,)

    # Kernel 1 (prologue): HW_aug = [(H @ W) * D_out^{-1/2} | ones], bf16, once.
    hw_aug = pl.pallas_call(
        _hw_prep_kernel,
        out_shape=jax.ShapeDtypeStruct((n_pad, nhid_pad), jnp.bfloat16),
        grid=grid,
        in_specs=[
            pl.BlockSpec((tm, nfeat_pad), lambda i: (i, 0)),
            pl.BlockSpec((nfeat_pad, nhid_pad), lambda i: (0, 0)),
            pl.BlockSpec((tm, 1), lambda i: (i, 0)),
        ],
        out_specs=pl.BlockSpec((tm, nhid_pad), lambda i: (i, 0)),
        compiler_params=cparams,
    )(h_p, w_p, norm_p)

    # Kernel 2 (hot loop): row-tiled aggregation + dst norm + bias + LayerNorm.
    out_p = pl.pallas_call(
        _make_agg_ln_kernel(nhid, eps),
        out_shape=jax.ShapeDtypeStruct((n_pad, nhid_pad), jnp.float32),
        grid=grid,
        in_specs=[
            pl.BlockSpec((tm, n_pad), lambda i: (i, 0)),         # streamed A row tile
            pl.BlockSpec((n_pad, nhid_pad), lambda i: (0, 0)),   # resident HW_aug
            pl.BlockSpec((1, nhid_pad), lambda i: (0, 0)),       # bias
            pl.BlockSpec((1, nhid_pad), lambda i: (0, 0)),       # gamma
            pl.BlockSpec((1, nhid_pad), lambda i: (0, 0)),       # beta
        ],
        out_specs=pl.BlockSpec((tm, nhid_pad), lambda i: (i, 0)),
        compiler_params=cparams,
    )(adj_p, hw_aug, b_p, g_p, beta_p)

    return out_p[:n, :nhid]


if __name__ == "__main__":
    N, NFEAT, NHID = 8, 16, 32

    key = jax.random.PRNGKey(0)
    k_adj, k_h, k_w = jax.random.split(key, 3)

    # Random directed graph (dense adjacency, A[dst, src] = 1), no self-loops added.
    adj = (jax.random.uniform(k_adj, (N, N)) < 0.3).astype(jnp.float32)

    # Node features.
    h = jax.random.normal(k_h, (N, NFEAT), dtype=jnp.float32)

    # Parameters (GraphConv weight xavier-ish, bias zeros; LayerNorm defaults).
    w = jax.random.normal(k_w, (NFEAT, NHID), dtype=jnp.float32) * (1.0 / jnp.sqrt(NFEAT))
    b = jnp.zeros((1, NHID), dtype=jnp.float32)
    gamma = jnp.ones((1, NHID), dtype=jnp.float32)
    beta = jnp.zeros((1, NHID), dtype=jnp.float32)

    out = gcn_layer_forward(adj, h, w, b, gamma, beta)
    jax.block_until_ready(out)

    # Pure-JAX f32 reference for sanity.
    deg_in = adj.sum(axis=1, keepdims=True)
    deg_out = adj.sum(axis=0, keepdims=True)
    ni = jnp.where(deg_in > 0, deg_in ** -0.5, 0.0)
    no = jnp.where(deg_out > 0, deg_out ** -0.5, 0.0)
    x_ref = (adj * ni * no) @ (h @ w) + b
    mu = x_ref.mean(-1, keepdims=True)
    var = ((x_ref - mu) ** 2).mean(-1, keepdims=True)
    ref = (x_ref - mu) / jnp.sqrt(var + 1e-5) * gamma + beta

    # HW is carried in bf16 inside the kernel (per perf review) -> bf16-level tol.
    assert jnp.allclose(out, ref, atol=3e-2, rtol=3e-2), "mismatch vs JAX reference"

    print("KERNEL_OK")
</pallas_src>

<mosaic_0001>
module attributes {stable_mosaic.version = 11 : i64} {
  func.func @_hw_prep_kernel(%arg0: i32, %arg1: memref<16x128xf32, #tpu.memory_space<vmem>>, %arg2: memref<128x128xf32, #tpu.memory_space<vmem>>, %arg3: memref<16x1xf32, #tpu.memory_space<vmem>>, %arg4: memref<16x128xbf16, #tpu.memory_space<vmem>>) attributes {dimension_semantics = [#tpu.dimension_semantics<parallel>], iteration_bounds = array<i64: 1>, scalar_prefetch = 0 : i64, scratch_operands = 0 : i64, tpu.core_type = #tpu.core_type<tc>, window_params = [{transform_indices = @transform_0, window_bounds = array<i64: 16, 128>}, {pipeline_mode = #tpu.pipeline_mode<synchronous>, transform_indices = @transform_1, window_bounds = array<i64: 128, 128>}, {transform_indices = @transform_2, window_bounds = array<i64: 16, 1>}, {transform_indices = @transform_3, window_bounds = array<i64: 16, 128>}]} {
    %c0 = arith.constant 0 : index
    %c0_0 = arith.constant 0 : index
    %0 = vector.load %arg1[%c0, %c0_0] : memref<16x128xf32, #tpu.memory_space<vmem>>, vector<16x128xf32>
    %c0_1 = arith.constant 0 : index
    %c0_2 = arith.constant 0 : index
    %1 = vector.load %arg2[%c0_1, %c0_2] : memref<128x128xf32, #tpu.memory_space<vmem>>, vector<128x128xf32>
    %cst = arith.constant dense<0.000000e+00> : vector<16x128xf32>
    %2 = tpu.matmul %0, %1, %cst {dimension_numbers = #tpu.dot_dimension_numbers<[1], [0], [0], [1], [0, 0, 1, 1], [], []>} : vector<16x128xf32>, vector<128x128xf32>, vector<16x128xf32> -> vector<16x128xf32>
    %c0_3 = arith.constant 0 : index
    %c0_4 = arith.constant 0 : index
    %3 = vector.load %arg3[%c0_3, %c0_4] : memref<16x1xf32, #tpu.memory_space<vmem>>, vector<16x1xf32>
    %4 = vector.broadcast %3 : vector<16x1xf32> to vector<16x128xf32>
    %5 = arith.mulf %2, %4 : vector<16x128xf32>
    %6 = tpu.iota {dimensions = array<i32: 1>} : vector<1x128xi32>
    %c127_i32 = arith.constant 127 : i32
    %7 = vector.broadcast %c127_i32 : i32 to vector<1x128xi32>
    %8 = arith.cmpi eq, %6, %7 : vector<1x128xi32>
    %cst_5 = arith.constant 1.000000e+00 : f32
    %9 = vector.shape_cast %8 : vector<1x128xi1> to vector<1x128xi1>
    %10 = vector.broadcast %9 : vector<1x128xi1> to vector<16x128xi1>
    %11 = vector.broadcast %cst_5 : f32 to vector<16x128xf32>
    %12 = arith.select %10, %11, %5 : vector<16x128xi1>, vector<16x128xf32>
    %13 = arith.truncf %12 : vector<16x128xf32> to vector<16x128xbf16>
    %c0_6 = arith.constant 0 : index
    %c0_7 = arith.constant 0 : index
    %14 = vector.load %arg4[%c0_6, %c0_7] : memref<16x128xbf16, #tpu.memory_space<vmem>>, vector<16x128xbf16>
    tpu.vector_store %arg4[%c0_6, %c0_7], %13 {strides = array<i32>} : memref<16x128xbf16, #tpu.memory_space<vmem>>, vector<16x128xbf16>,
    return
  }
  func.func @transform_0(%arg0: i32) -> (i32, i32) {
    %c0_i32 = arith.constant 0 : i32
    %c0_i32_0 = arith.constant 0 : i32
    return %arg0, %c0_i32 : i32, i32
  }
  func.func @transform_1(%arg0: i32) -> (i32, i32) {
    %c0_i32 = arith.constant 0 : i32
    %c0_i32_0 = arith.constant 0 : i32
    %c0_i32_1 = arith.constant 0 : i32
    return %c0_i32, %c0_i32_0 : i32, i32
  }
  func.func @transform_2(%arg0: i32) -> (i32, i32) {
    %c0_i32 = arith.constant 0 : i32
    %c0_i32_0 = arith.constant 0 : i32
    return %arg0, %c0_i32 : i32, i32
  }
  func.func @transform_3(%arg0: i32) -> (i32, i32) {
    %c0_i32 = arith.constant 0 : i32
    %c0_i32_0 = arith.constant 0 : i32
    return %arg0, %c0_i32 : i32, i32
  }
}

</mosaic_0001>

<bundles_post_ra>
// kernel: tpu_custom_call.1
= control target key start
LH: loop header
LB: loop body
LE: loop exit
PB: predicated region body
PF: predicated region fallthrough
CT: control target
= control target key end

     0   :  { %8 = vsyncpa [#allocation3], 0  ;;  %s329_s0 = inlined_call_operand.vmem [shape: f32[16,128], index: 0, kind: input, shape index: {}]   ;;  %s330_s1 = inlined_call_operand.hbm [shape: f32[128,128], index: 1, kind: input, shape index: {}]   ;;  %s331_s2 = inlined_call_operand.vmem [shape: f32[16,1], index: 2, kind: input, shape index: {}]   ;;  %s332_s3 = inlined_call_operand.hbm [shape: bf16[16,128], index: 3, kind: output, shape index: {}]  }
   0x1   :  { %9 = vsyncpa [#allocation4], 0  ;;  %s284_s12 = smov [#allocation2]  }
   0x2   :  { %s17_s13 = sshll.u32 %s284_s12, 4  ;;  %s18_s13 = int_to_ptr.vmem [resolvable:$true] %s17_s13 }
   0x3   :  { %s248_s14 = scalar_lea.vmem %s18_s13, 2048  ;;  %p253_p1 = scmp.lt.s32.totalorder %s18_s13, %s18_s13 }
   0x4   :  { %p249_p0 = scmp.ne.s32.totalorder %s18_s13, %s248_s14  ;;  %p254_p2 = scmp.lt.s32.totalorder %s248_s14, %s248_s14 }
   0x6   :  { %p255_p3 = por %p254_p2, %p253_p1 }
   0x8   :  { %p256_p4 = pnand %p255_p3, %p249_p0 }
   0xa   :  { %259 = shalt.err (!%p256_p4)
}
   0xb   :  { %s285_s15 = smov 128   ;;  %s286_s16 = smov 8  }
   0xc   :  { %23 = dma.hbm_to_vmem [thread:$0]  %s330_s1, 2048, %s18_s13, [#allocation3], %s285_s15, %s285_s15, %s286_s16  }
   0xd   :  { %280 = dma.done.wait [#allocation3], 2048  }
   0xe   :  { %281 = vsyncadd [#allocation3], 4294965248  ;;  %v287_v0 = vmov 0   ;;  %v46_v1 = vld [vmem:[#allocation2 + $0x78] sm:$0xff]  ;;  %v45_v2 = vld [vmem:[#allocation2 + $0x70] sm:$0xff]  ;;  %v136_v22 = vlaneseq  ;;  %s288_s25 = smov [#allocation5]  }
   0xf   :  { %239 = vset.pattern.permute.xlu0 %v287_v0  ;;  %197 = vmatprep.subr.mxu0 %v46_v1  ;;  %v44_v3 = vld [vmem:[#allocation2 + $0x68] sm:$0xff]  ;;  %v43_v4 = vld [vmem:[#allocation2 + $0x60] sm:$0xff]  ;;  %v42_v6 = vld [vmem:[#allocation2 + $0x58] sm:$0xff]  ;;  %s158_s26 = sshll.u32 %s288_s25, 4  ;;  %s159_s26 = int_to_ptr.vmem [resolvable:$true] %s158_s26 }
  0x10   :  { %198 = vmatpush3.msra.mxu0 %v46_v1  ;;  %v29_v5 = vld [vmem:[%s329_s0] sm:$0xff]  ;;  %v41_v8 = vld [vmem:[#allocation2 + $0x50] sm:$0xff]  ;;  %v123_v9 = vld [vmem:[%s331_s2 + $0x8] sm:$0xff]  ;;  %v137_v23 = vand.u32 127, %v136_v22  ;;  %p265_p6 = scmp.lt.s32.totalorder %s159_s26, %s159_s26 }
  0x11   :  { %199 = vmatprep.subr.mxu0 %v45_v2  ;;  %229 = vmatprep.mubr.f32.mxu0 %v29_v5  ;;  %v122_v7 = vld [vmem:[%s331_s2] sm:$0xff]  ;;  %v40_v10 = vld [vmem:[#allocation2 + $0x48] sm:$0xff]  ;;  %v38_v12 = vld [vmem:[#allocation2 + $0x38] sm:$0xff] }
  0x12   :  { %200 = vmatpush3.msra.mxu0 %v45_v2  ;;  %126 = vperm.xlu0 %239, %v122_v7   ;;  %v39_v11 = vld [vmem:[#allocation2 + $0x40] sm:$0xff]  ;;  %v37_v13 = vld [vmem:[#allocation2 + $0x30] sm:$0xff]  ;;  %v36_v14 = vld [vmem:[#allocation2 + $0x28] sm:$0xff]  ;;  %vm138_vm0 = vcmp.eq.s32.totalorder %v137_v23, 127 }
  0x13   :  { %201 = vmatprep.subr.mxu0 %v44_v3  ;;  %v35_v15 = vld [vmem:[#allocation2 + $0x20] sm:$0xff]  ;;  %v34_v16 = vld [vmem:[#allocation2 + $0x18] sm:$0xff]  ;;  %v33_v17 = vld [vmem:[#allocation2 + $0x10] sm:$0xff] }
  0x14   :  { %202 = vmatpush3.msra.mxu0 %v44_v3  ;;  %v32_v18 = vld [vmem:[#allocation2 + $0x8] sm:$0xff]  ;;  %v31_v19 = vld [vmem:[#allocation2] sm:$0xff] }
  0x15   :  { %203 = vmatprep.subr.mxu0 %v43_v4  ;;  %v30_v20 = vld [vmem:[%s329_s0 + $0x8] sm:$0xff]  ;;  %s260_s0 = scalar_lea.vmem %s159_s26, 128 }
  0x16   :  { %204 = vmatpush3.msra.mxu0 %v43_v4  ;;  %131 = vperm.xlu0 %239, %v123_v9   ;;  %p261_p5 = scmp.ne.s32.totalorder %s159_s26, %s260_s0  ;;  %p266_p7 = scmp.lt.s32.totalorder %s260_s0, %s260_s0 }
  0x17   :  { %205 = vmatprep.subr.mxu0 %v42_v6 }
  0x18   :  { %206 = vmatpush3.msra.mxu0 %v42_v6  ;;  %p267_p8 = por %p266_p7, %p265_p6 }
  0x19   :  { %207 = vmatprep.subr.mxu0 %v41_v8 }
  0x1a   :  { %208 = vmatpush3.msra.mxu0 %v41_v8  ;;  %p268_p9 = pnand %p267_p8, %p261_p5 }
  0x1b   :  { %209 = vmatprep.subr.mxu0 %v40_v10 }
  0x1c   :  { %210 = vmatpush3.msra.mxu0 %v40_v10 }
  0x1d   :  { %211 = vmatprep.subr.mxu0 %v39_v11 }
  0x1e   :  { %212 = vmatpush3.msra.mxu0 %v39_v11 }
  0x1f   :  { %213 = vmatprep.subr.mxu0 %v38_v12 }
  0x20   :  { %214 = vmatpush3.msra.mxu0 %v38_v12 }
  0x21   :  { %215 = vmatprep.subr.mxu0 %v37_v13 }
  0x22   :  { %216 = vmatpush3.msra.mxu0 %v37_v13 }
  0x23   :  { %217 = vmatprep.subr.mxu0 %v36_v14 }
  0x24   :  { %218 = vmatpush3.msra.mxu0 %v36_v14 }
  0x25   :  { %219 = vmatprep.subr.mxu0 %v35_v15 }
  0x26   :  { %220 = vmatpush3.msra.mxu0 %v35_v15 }
  0x27   :  { %221 = vmatprep.subr.mxu0 %v34_v16 }
  0x28   :  { %222 = vmatpush3.msra.mxu0 %v34_v16 }
  0x29   :  { %223 = vmatprep.subr.mxu0 %v33_v17 }
  0x2a   :  { %224 = vmatpush3.msra.mxu0 %v33_v17 }
  0x2b   :  { %225 = vmatprep.subr.mxu0 %v32_v18 }
  0x2c   :  { %226 = vmatpush3.msra.mxu0 %v32_v18 }
  0x2d   :  { %227 = vmatprep.subr.mxu0 %v31_v19 }
  0x2e   :  { %228 = vmatpush3.msra.mxu0 %v31_v19 }
  0x2f   :  { %230 = vmatmul.mubr.f32.vlgmr.msra.gmra.mxu0 %v30_v20 }
  0x8d   :  { %v127_v21 = vpop.permute.xlu0 %126 }
  0x91   :  { %v132_v24 = vpop.permute.xlu0 %131 }
  0xef   :  { %v231_v25 = vpop.f32.mrf.mxu0 }
  0xf0   :  { %v135_v26 = vmul.f32 %v231_v25, %v132_v24 }
  0xf1   :  { %v113_v27 = vpop.f32.mrf.mxu0 }
  0xf2   :  { %v134_v28 = vmul.f32 %v127_v21, %v113_v27  ;;  %v142_v29 = vsel %vm138_vm0, 1.0, %v135_v26 }
  0xf4   :  { %v141_v30 = vsel %vm138_vm0, 1.0, %v134_v28 }
  0xf5   :  { %v177_v31 = vpack.c.bf16 %v142_v29, %v141_v30 }
  0xf7   :  { %178 = vst [vmem:[#allocation5] sm:$0xff] %v177_v31  }
  0xf8   :  { %271 = shalt.err (!%p268_p9)
}
  0xf9   :  { %s289_s27 = smov 64   ;;  %s290_s28 = smov 4  }
  0xfa   :  { %164 = dma.vmem_to_hbm [thread:$0]  %s159_s26, 128, %s332_s3, [#allocation4], %s289_s27, %s289_s27, %s290_s28  }
  0xfb   :  { %282 = dma.done.wait [#allocation4], 128  }
  0xfc   :  { %283 = vsyncadd [#allocation4], 4294967168 }
  0xfd   :  { %168 = vsyncpa [#allocation3], 1 }
  0xfe   :  { %169 = vsyncpa [#allocation4], 1 }

</bundles_post_ra>
